<compile_context>
chip_gen: v6e
topology: v6e:2x2x1
jax: 0.10.0
libtpu: 0.0.40
codegen_flags: <defaults>
</compile_context>

<pallas_src>
import jax
import jax.numpy as jnp
from jax.experimental import pallas as pl
from jax.experimental.pallas import tpu as pltpu


def _vit_kernel(x_ref, row0_ref, pos_rest_ref, o_ref):
    # x_ref:        (Bt, N,   E)  patch embeddings for Bt batch elements (streamed)
    # row0_ref:     (1,  1,   E)  cls_token + pos_embedding[:, 0, :]     (resident)
    # pos_rest_ref: (1,  N,   E)  pos_embedding[:, 1:, :]                (resident)
    # o_ref:        (Bt, N+1, E)  output
    bt = o_ref.shape[0]
    e = o_ref.shape[2]

    # Row 0 of the output is identical for every batch element (precomputed in wrapper).
    o_ref[:, 0:1, :] = jnp.broadcast_to(row0_ref[...], (bt, 1, e))

    # Rows 1..N: pure streaming add; both operands start at sublane 0 (aligned).
    o_ref[:, 1:, :] = x_ref[...] + pos_rest_ref[...]


def _vmem_budget_and_limit():
    """Generation-aware VMEM working-set budget and scoped-VMEM limit (bytes)."""
    budget, limit = 24 << 20, 40 << 20          # safe on v7x (64 MiB VMEM per TC)
    try:
        cap = pltpu.get_tpu_info().vmem_capacity_bytes
        if cap >= (96 << 20):                   # v5e / v6e: 128 MiB physical VMEM
            budget, limit = 48 << 20, 64 << 20
    except Exception:
        pass                                    # unknown target -> stay conservative
    return budget, limit


def _pick_batch_tile(b, n, e, itemsize, vmem_budget_bytes, target_steps):
    """How many batch elements to process per grid step."""
    # Streaming bytes per batch element (single buffer): input slab + output slab.
    stream_elem = (n * e + (n + 1) * e) * itemsize
    # Double-buffered streaming slabs per element; resident operands counted twice for safety.
    per_elem_db = 2 * stream_elem
    resident = 2 * ((n + 1) * e) * itemsize
    avail = max(vmem_budget_bytes - resident, per_elem_db)
    bt_vmem = max(1, avail // per_elem_db)

    # Enough steps for DMA/compute overlap (and megacore sharding) ...
    bt_steps = -(-b // target_steps)                       # ceil(b / target_steps)
    # ... but keep each step's streamed slab >= ~1 MiB (amortize ~0.35us/step + DMA setup).
    bt_minslab = -(-(1 << 20) // stream_elem)              # ceil(1 MiB / stream_elem)

    bt = min(bt_vmem, max(bt_steps, bt_minslab))
    return int(max(1, min(b, bt)))


def vision_transformer_forward(img, cls_token, pos_embedding):
    """img: (B, N, E); cls_token: (1, 1, E); pos_embedding: (1, N+1, E) -> (B, N+1, E)."""
    b, n, e = img.shape
    assert cls_token.shape == (1, 1, e)
    assert pos_embedding.shape == (1, n + 1, e)

    dtype = img.dtype
    # Precompute resident operands in the wrapper (tiny (1, N+1, E) ops, done once):
    row0 = (cls_token + pos_embedding[:, :1, :]).astype(dtype)      # (1, 1, E)
    pos_rest = pos_embedding[:, 1:, :].astype(dtype)                # (1, N, E)

    budget, limit = _vmem_budget_and_limit()
    itemsize = jnp.dtype(dtype).itemsize
    bt = _pick_batch_tile(b, n, e, itemsize, budget, target_steps=8)
    grid = (pl.cdiv(b, bt),)   # overhanging last block (if any) is boundary-masked

    # NOTE: last two dims of every block equal the full array dims, so the (8,128)
    # tiling rule holds even at toy shapes (E=32). For production ViT shapes keep E a
    # multiple of 128 (E < 128 wastes lanes / forces masked stores on the last axis).
    return pl.pallas_call(
        _vit_kernel,
        out_shape=jax.ShapeDtypeStruct((b, n + 1, e), dtype),
        grid_spec=pltpu.PrefetchScalarGridSpec(
            num_scalar_prefetch=0,
            grid=grid,
            in_specs=[
                pl.BlockSpec((bt, n, e), lambda i: (i, 0, 0)),       # streamed batch slab
                pl.BlockSpec((1, 1, e), lambda i: (0, 0, 0)),        # row0 (resident)
                pl.BlockSpec((1, n, e), lambda i: (0, 0, 0)),        # pos_rest (resident)
            ],
            out_specs=pl.BlockSpec((bt, n + 1, e), lambda i: (i, 0, 0)),
        ),
        compiler_params=pltpu.CompilerParams(
            dimension_semantics=("parallel",),
            vmem_limit_bytes=limit,
        ),
    )(img, row0, pos_rest)


def reference_forward(img, cls_token, pos_embedding):
    b = img.shape[0]
    cls = jnp.broadcast_to(cls_token, (b, 1, img.shape[2]))
    x = jnp.concatenate([cls, img], axis=1)
    return x + pos_embedding


if __name__ == "__main__":
    # Small shapes consistent with the module: batch=2, num_patches=8, embed_size=32.
    batch, num_patches, embed_size = 2, 8, 32

    key = jax.random.PRNGKey(0)
    k_img, k_pos, k_cls = jax.random.split(key, 3)

    img = jax.random.normal(k_img, (batch, num_patches, embed_size), dtype=jnp.float32)
    # Deterministic "torch.randn"-style parameter init (synthetic, not a checkpoint load).
    pos_embedding = jax.random.normal(k_pos, (1, num_patches + 1, embed_size), dtype=jnp.float32)
    cls_token = jax.random.normal(k_cls, (1, 1, embed_size), dtype=jnp.float32)

    out = vision_transformer_forward(img, cls_token, pos_embedding)
    out = jax.block_until_ready(out)

    ref = reference_forward(img, cls_token, pos_embedding)
    assert out.shape == (batch, num_patches + 1, embed_size)
    assert jnp.allclose(out, ref, atol=1e-6, rtol=1e-6), "mismatch vs reference"

    print("KERNEL_OK")
</pallas_src>

<mosaic_0001>
module attributes {stable_mosaic.version = 11 : i64} {
  func.func @_vit_kernel(%arg0: i32, %arg1: memref<2x8x32xf32, #tpu.memory_space<vmem>>, %arg2: memref<1x1x32xf32, #tpu.memory_space<vmem>>, %arg3: memref<1x8x32xf32, #tpu.memory_space<vmem>>, %arg4: memref<2x9x32xf32, #tpu.memory_space<vmem>>) attributes {dimension_semantics = [#tpu.dimension_semantics<parallel>], iteration_bounds = array<i64: 1>, scalar_prefetch = 0 : i64, scratch_operands = 0 : i64, tpu.core_type = #tpu.core_type<tc>, window_params = [{transform_indices = @transform_0, window_bounds = array<i64: 2, 8, 32>}, {pipeline_mode = #tpu.pipeline_mode<synchronous>, transform_indices = @transform_1, window_bounds = array<i64: 1, 1, 32>}, {pipeline_mode = #tpu.pipeline_mode<synchronous>, transform_indices = @transform_2, window_bounds = array<i64: 1, 8, 32>}, {transform_indices = @transform_3, window_bounds = array<i64: 2, 9, 32>}]} {
    %c0 = arith.constant 0 : index
    %c0_0 = arith.constant 0 : index
    %c0_1 = arith.constant 0 : index
    %0 = vector.load %arg2[%c0, %c0_0, %c0_1] : memref<1x1x32xf32, #tpu.memory_space<vmem>>, vector<1x1x32xf32>
    %1 = vector.shape_cast %0 : vector<1x1x32xf32> to vector<1x1x32xf32>
    %2 = vector.broadcast %1 : vector<1x1x32xf32> to vector<2x1x32xf32>
    %c0_2 = arith.constant 0 : index
    %c0_3 = arith.constant 0 : index
    %c0_4 = arith.constant 0 : index
    %3 = vector.load %arg4[%c0_2, %c0_3, %c0_4] : memref<2x9x32xf32, #tpu.memory_space<vmem>>, vector<2x1x32xf32>
    tpu.vector_store %arg4[%c0_2, %c0_3, %c0_4], %2 {strides = array<i32>} : memref<2x9x32xf32, #tpu.memory_space<vmem>>, vector<2x1x32xf32>,
    %c0_5 = arith.constant 0 : index
    %c0_6 = arith.constant 0 : index
    %c0_7 = arith.constant 0 : index
    %4 = vector.load %arg1[%c0_5, %c0_6, %c0_7] : memref<2x8x32xf32, #tpu.memory_space<vmem>>, vector<2x8x32xf32>
    %c0_8 = arith.constant 0 : index
    %c0_9 = arith.constant 0 : index
    %c0_10 = arith.constant 0 : index
    %5 = vector.load %arg3[%c0_8, %c0_9, %c0_10] : memref<1x8x32xf32, #tpu.memory_space<vmem>>, vector<1x8x32xf32>
    %6 = vector.broadcast %5 : vector<1x8x32xf32> to vector<2x8x32xf32>
    %7 = arith.addf %4, %6 : vector<2x8x32xf32>
    %c0_11 = arith.constant 0 : index
    %c1 = arith.constant 1 : index
    %c0_12 = arith.constant 0 : index
    %8 = vector.load %arg4[%c0_11, %c1, %c0_12] : memref<2x9x32xf32, #tpu.memory_space<vmem>>, vector<2x8x32xf32>
    tpu.vector_store %arg4[%c0_11, %c1, %c0_12], %7 {strides = array<i32>} : memref<2x9x32xf32, #tpu.memory_space<vmem>>, vector<2x8x32xf32>,
    return
  }
  func.func @transform_0(%arg0: i32) -> (i32, i32, i32) {
    %c0_i32 = arith.constant 0 : i32
    %c0_i32_0 = arith.constant 0 : i32
    %c0_i32_1 = arith.constant 0 : i32
    return %arg0, %c0_i32, %c0_i32_0 : i32, i32, i32
  }
  func.func @transform_1(%arg0: i32) -> (i32, i32, i32) {
    %c0_i32 = arith.constant 0 : i32
    %c0_i32_0 = arith.constant 0 : i32
    %c0_i32_1 = arith.constant 0 : i32
    %c0_i32_2 = arith.constant 0 : i32
    return %c0_i32, %c0_i32_0, %c0_i32_1 : i32, i32, i32
  }
  func.func @transform_2(%arg0: i32) -> (i32, i32, i32) {
    %c0_i32 = arith.constant 0 : i32
    %c0_i32_0 = arith.constant 0 : i32
    %c0_i32_1 = arith.constant 0 : i32
    %c0_i32_2 = arith.constant 0 : i32
    return %c0_i32, %c0_i32_0, %c0_i32_1 : i32, i32, i32
  }
  func.func @transform_3(%arg0: i32) -> (i32, i32, i32) {
    %c0_i32 = arith.constant 0 : i32
    %c0_i32_0 = arith.constant 0 : i32
    %c0_i32_1 = arith.constant 0 : i32
    return %arg0, %c0_i32, %c0_i32_0 : i32, i32, i32
  }
}

</mosaic_0001>

<bundles_post_ra>
// kernel: tpu_custom_call.1
= control target key start
LH: loop header
LB: loop body
LE: loop exit
PB: predicated region body
PF: predicated region fallthrough
CT: control target
= control target key end

     0   :  { %8 = vsyncpa [#allocation3], 0  ;;  %s151_s0 = inlined_call_operand.hbm [shape: f32[2,8,32], index: 0, kind: input, shape index: {}]   ;;  %s152_s1 = inlined_call_operand.vmem [shape: f32[1,1,32], index: 1, kind: input, shape index: {}]   ;;  %s153_s2 = inlined_call_operand.hbm [shape: f32[1,8,32], index: 2, kind: input, shape index: {}]   ;;  %s154_s3 = inlined_call_operand.vmem [shape: f32[2,9,32], index: 3, kind: output, shape index: {}]  }
   0x1   :  { %9 = vsyncpa [#allocation5], 0  ;;  %s106_s12 = smov [#allocation2]  }
   0x2   :  { %s15_s13 = sshll.u32 %s106_s12, 4  ;;  %s16_s13 = int_to_ptr.vmem [resolvable:$true] %s15_s13 }
   0x3   :  { %s70_s14 = scalar_lea.vmem %s16_s13, 256  ;;  %p75_p1 = scmp.lt.s32.totalorder %s16_s13, %s16_s13 }
   0x4   :  { %p71_p0 = scmp.ne.s32.totalorder %s16_s13, %s70_s14  ;;  %p76_p2 = scmp.lt.s32.totalorder %s70_s14, %s70_s14 }
   0x6   :  { %p77_p3 = por %p76_p2, %p75_p1 }
   0x8   :  { %p78_p4 = pnand %p77_p3, %p71_p0 }
   0xa   :  { %81 = shalt.err (!%p78_p4)
}
   0xb   :  { %s107_s15 = smov 128   ;;  %s108_s16 = smov 8  }
   0xc   :  { %21 = dma.hbm_to_vmem [thread:$0]  %s151_s0, 256, %s16_s13, [#allocation3], %s107_s15, %s107_s15, %s108_s16  }
   0xd   :  { %s109_s19 = smov [#allocation4]  }
   0xe   :  { %s30_s20 = sshll.u32 %s109_s19, 4  ;;  %s31_s20 = int_to_ptr.vmem [resolvable:$true] %s30_s20 }
   0xf   :  { %s90_s21 = scalar_lea.vmem %s31_s20, 128  ;;  %p95_p6 = scmp.lt.s32.totalorder %s31_s20, %s31_s20 }
  0x10   :  { %p91_p5 = scmp.ne.s32.totalorder %s31_s20, %s90_s21  ;;  %p96_p7 = scmp.lt.s32.totalorder %s90_s21, %s90_s21 }
  0x12   :  { %p97_p8 = por %p96_p7, %p95_p6 }
  0x14   :  { %p98_p9 = pnand %p97_p8, %p91_p5 }
  0x16   :  { %101 = shalt.err (!%p98_p9)
}
  0x17   :  { %33 = dma.hbm_to_vmem [thread:$0]  %s153_s2, 128, %s31_s20, [#allocation5]  }
  0x18   :  { %102 = dma.done.wait [#allocation3], 256  }
  0x19   :  { %103 = vsyncadd [#allocation3], 4294967040 }
  0x1a   :  { %104 = dma.done.wait [#allocation5], 128  }
  0x1b   :  { %105 = vsyncadd [#allocation5], 4294967168  ;;  %vm41_vm0 = vcmask 253952   ;;  %v40_v0 = vld [vmem:[%s152_s1] sm:$0x1]  ;;  %v46_v2 = vld [vmem:[#allocation4] sm:$0xff] }
  0x1c   :  { %v44_v1 = vld [vmem:[#allocation2] sm:$0xff]  ;;  %vm49_vm1 = vcmask 261120   ;;  %42 = vst.msk [vmem:[%s154_s3] sm:$0x1] %vm41_vm0, %v40_v0  ;;  %43 = vst.msk [vmem:[%s154_s3 + $0x10] sm:$0x1] %vm41_vm0, %v40_v0 }
  0x1d   :  { %v47_v3 = vadd.f32 %v46_v2, %v44_v1  ;;  %v45_v4 = vld [vmem:[#allocation2 + $0x8] sm:$0xff] }
  0x1e   :  { %v48_v5 = vadd.f32 %v46_v2, %v45_v4 }
  0x1f   :  { %50 = vst.msk [vmem:[%s154_s3 + $0x1] sm:$0xff] %vm49_vm1, %v47_v3 }
  0x20   :  { %51 = vst.msk [vmem:[%s154_s3 + $0x11] sm:$0xff] %vm49_vm1, %v48_v5 }
  0x21   :  { %56 = vsyncpa [#allocation3], 1 }
  0x22   :  { %57 = vsyncpa [#allocation5], 1 }

</bundles_post_ra>
